<compile_context>
chip_gen: v7x
topology: tpu7x:2x2x1
jax: 0.10.0
libtpu: 0.0.40
codegen_flags: <defaults>
</compile_context>

<pallas_src>
import functools
import math

import jax
import jax.numpy as jnp
from jax.experimental import pallas as pl
from jax.experimental.pallas import tpu as pltpu


# ----------------------------- kernel bodies ------------------------------ #

def _parallel_body(x_ref, w_ref, b_ref, o_ref):
    """x_ref: (TB, K, L)  w_ref: (K, L, J)  b_ref: (K, J)|None  o_ref: (TB, K, J)."""
    k_par = w_ref.shape[0]
    if b_ref is not None:
        b = b_ref[...].astype(jnp.float32)          # hoisted load + cast
    for k in range(k_par):                          # static unroll; K is small
        acc = jnp.dot(x_ref[:, k, :], w_ref[k],
                      preferred_element_type=jnp.float32)    # (TB, J) on MXU
        if b_ref is not None:
            acc = acc + b[k:k + 1, :]               # (1, J) broadcast over TB
        o_ref[:, k, :] = acc.astype(o_ref.dtype)


def _parallel_kernel_bias(x_ref, w_ref, b_ref, o_ref):
    _parallel_body(x_ref, w_ref, b_ref, o_ref)


def _parallel_kernel_nobias(x_ref, w_ref, o_ref):
    _parallel_body(x_ref, w_ref, None, o_ref)


def _shared_body(x_ref, w_ref, b_ref, o_ref):
    """x_ref: (TM, L)  w_ref: (L, J)  b_ref: (1, J)|None  o_ref: (TM, J)."""
    acc = jnp.dot(x_ref[...], w_ref[...], preferred_element_type=jnp.float32)
    if b_ref is not None:
        acc = acc + b_ref[...].astype(jnp.float32)  # (1, J) broadcasts over rows
    o_ref[...] = acc.astype(o_ref.dtype)


def _shared_kernel_bias(x_ref, w_ref, b_ref, o_ref):
    _shared_body(x_ref, w_ref, b_ref, o_ref)


def _shared_kernel_nobias(x_ref, w_ref, o_ref):
    _shared_body(x_ref, w_ref, None, o_ref)


# ----------------------------- tiling helpers ------------------------------ #

_DEFAULT_SCOPED_VMEM = 32 * 1024 * 1024     # Mosaic scoped-VMEM default
_VMEM_CEILING = 56 * 1024 * 1024            # stay under v7x's 64 MiB physical
_BLOCK_BUDGET = 20 * 1024 * 1024            # target working set per call


def _pick_row_tile(n_rows, bytes_per_row, resident_bytes, align):
    """Largest row tile whose double-buffered blocks + resident weight fit."""
    tile = n_rows
    while tile > align and resident_bytes + 2 * tile * bytes_per_row > _BLOCK_BUDGET:
        tile = max(align, tile // 2)
    if tile != n_rows:                      # shrunk: keep it (8,128)-friendly
        tile = max(align, (tile // align) * align)
    return tile


def _compiler_params(est_vmem_bytes):
    kwargs = dict(dimension_semantics=("parallel",))   # shard row-tile grid
    if est_vmem_bytes > int(0.75 * _DEFAULT_SCOPED_VMEM):
        kwargs["vmem_limit_bytes"] = int(min(1.3 * est_vmem_bytes, _VMEM_CEILING))
    return pltpu.CompilerParams(**kwargs)


def _cost_estimate(B, K, L, J, itemsize, w_items, b_items):
    flops = 2 * B * K * L * J
    bytes_accessed = itemsize * (B * K * L + B * K * J + w_items + b_items)
    return pl.CostEstimate(flops=flops, transcendentals=0,
                           bytes_accessed=bytes_accessed)


# ----------------------------- pallas_call wrappers ------------------------ #

def _parallel_linear_unshared(x, weight, bias):
    """x: (B,K,L), weight: (K,L,J), bias: (K,J) or None -> (B,K,J)."""
    B, K, L = x.shape
    J = weight.shape[-1]
    itemsize = x.dtype.itemsize

    resident = K * L * J * weight.dtype.itemsize
    b_items = 0
    if bias is not None:
        resident += K * J * bias.dtype.itemsize
        b_items = K * J
    row_bytes = K * (L + J) * itemsize                # x-row + out-row per b
    tb = _pick_row_tile(B, row_bytes, resident, align=1)
    grid = (pl.cdiv(B, tb),)

    x_spec = pl.BlockSpec((tb, K, L), lambda i: (i, 0, 0))
    w_spec = pl.BlockSpec((K, L, J), lambda i: (0, 0, 0))    # fully resident
    o_spec = pl.BlockSpec((tb, K, J), lambda i: (i, 0, 0))

    if bias is None:
        kernel = _parallel_kernel_nobias
        in_specs = [x_spec, w_spec]
        args = (x, weight)
    else:
        b_spec = pl.BlockSpec((K, J), lambda i: (0, 0))      # fully resident
        kernel = _parallel_kernel_bias
        in_specs = [x_spec, w_spec, b_spec]
        args = (x, weight, bias)

    est = resident + 2 * tb * row_bytes
    return pl.pallas_call(
        kernel,
        out_shape=jax.ShapeDtypeStruct((B, K, J), x.dtype),
        grid_spec=pltpu.PrefetchScalarGridSpec(
            num_scalar_prefetch=0,
            grid=grid,
            in_specs=in_specs,
            out_specs=o_spec,
        ),
        compiler_params=_compiler_params(est),
        cost_estimate=_cost_estimate(B, K, L, J, itemsize, K * L * J, b_items),
    )(*args)


def _parallel_linear_shared(x, weight2d, bias2d):
    """x: (B,K,L), weight2d: (L,J), bias2d: (1,J) or None -> (B,K,J)."""
    B, K, L = x.shape
    J = weight2d.shape[-1]
    itemsize = x.dtype.itemsize
    M = B * K
    x2 = x.reshape(M, L)        # contiguous merge of leading dims: free

    resident = L * J * weight2d.dtype.itemsize
    b_items = 0
    if bias2d is not None:
        resident += J * bias2d.dtype.itemsize
        b_items = J
    row_bytes = (L + J) * itemsize
    tm = _pick_row_tile(M, row_bytes, resident, align=8)
    grid = (pl.cdiv(M, tm),)

    x_spec = pl.BlockSpec((tm, L), lambda i: (i, 0))
    w_spec = pl.BlockSpec((L, J), lambda i: (0, 0))          # fully resident
    o_spec = pl.BlockSpec((tm, J), lambda i: (i, 0))

    if bias2d is None:
        kernel = _shared_kernel_nobias
        in_specs = [x_spec, w_spec]
        args = (x2, weight2d)
    else:
        b_spec = pl.BlockSpec((1, J), lambda i: (0, 0))      # fully resident
        kernel = _shared_kernel_bias
        in_specs = [x_spec, w_spec, b_spec]
        args = (x2, weight2d, bias2d)

    est = resident + 2 * tm * row_bytes
    out2 = pl.pallas_call(
        kernel,
        out_shape=jax.ShapeDtypeStruct((M, J), x.dtype),
        grid_spec=pltpu.PrefetchScalarGridSpec(
            num_scalar_prefetch=0,
            grid=grid,
            in_specs=in_specs,
            out_specs=o_spec,
        ),
        compiler_params=_compiler_params(est),
        cost_estimate=_cost_estimate(B, K, L, J, itemsize, L * J, b_items),
    )(*args)
    return out2.reshape(B, K, J)  # free split of the leading dim


# ----------------------------- module-level API ----------------------------- #

@functools.partial(jax.jit, static_argnames=("n_parallel", "share"))
def parallel_linear_forward(x, weight, bias, n_parallel, share=False):
    """Matches ParallelLinear.forward.

    x:      (B, n_parallel, in_feat)
    weight: (n_parallel, in_feat, out_feat) if not share else (1, in_feat, out_feat)
    bias:   (1, n_parallel, out_feat) / (1, 1, out_feat) / None
    """
    B, K, L = x.shape
    assert K == n_parallel
    J = weight.shape[-1]
    if share:
        assert weight.shape == (1, L, J)
        b2 = None if bias is None else bias.reshape(1, J)
        return _parallel_linear_shared(x, weight[0], b2)
    assert weight.shape == (K, L, J)
    bk = None if bias is None else bias.reshape(K, J)
    return _parallel_linear_unshared(x, weight, bk)


def init_parallel_linear_params(key, n_parallel, in_feat, out_feat,
                                share=False, use_bias=True,
                                dtype=jnp.float32):
    """Deterministic init mirroring ParallelLinear.reset_parameters:
    kaiming_uniform_(weight[n].T, a=sqrt(5)) -> U(-1/sqrt(in_feat), 1/sqrt(in_feat));
    bias initialized to 0."""
    kw = 1 if share else n_parallel
    bound = 1.0 / math.sqrt(in_feat)
    weight = jax.random.uniform(key, (kw, in_feat, out_feat),
                                minval=-bound, maxval=bound, dtype=dtype)
    bias = jnp.zeros((1, kw, out_feat), dtype=dtype) if use_bias else None
    return weight, bias


# ----------------------------- self-test ----------------------------------- #

if __name__ == "__main__":
    # Small shapes consistent with the module: B=8, n_parallel=4, in=32, out=16
    B, K, L, J = 8, 4, 32, 16

    key = jax.random.PRNGKey(0)
    kx, kw, kb, kws, kbs = jax.random.split(key, 5)

    x = jax.random.normal(kx, (B, K, L), dtype=jnp.float32)
    bound = 1.0 / math.sqrt(L)

    # --- share=False, with bias (nonzero to exercise the add) ---
    weight = jax.random.uniform(kw, (K, L, J), minval=-bound, maxval=bound,
                                dtype=jnp.float32)
    bias = 0.1 * jax.random.normal(kb, (1, K, J), dtype=jnp.float32)

    out = parallel_linear_forward(x, weight, bias, n_parallel=K, share=False)
    out = jax.block_until_ready(out)
    ref = jnp.einsum('bkl,klj->bkj', x, weight) + bias
    assert out.shape == (B, K, J)
    assert jnp.allclose(out, ref, atol=1e-4, rtol=1e-4)

    # --- share=False, no bias ---
    out_nb = jax.block_until_ready(
        parallel_linear_forward(x, weight, None, n_parallel=K, share=False))
    ref_nb = jnp.einsum('bkl,klj->bkj', x, weight)
    assert jnp.allclose(out_nb, ref_nb, atol=1e-4, rtol=1e-4)

    # --- share=True, with bias ---
    w_sh = jax.random.uniform(kws, (1, L, J), minval=-bound, maxval=bound,
                              dtype=jnp.float32)
    b_sh = 0.1 * jax.random.normal(kbs, (1, 1, J), dtype=jnp.float32)
    out_sh = jax.block_until_ready(
        parallel_linear_forward(x, w_sh, b_sh, n_parallel=K, share=True))
    ref_sh = jnp.einsum('bkl,lj->bkj', x, w_sh[0]) + b_sh
    assert out_sh.shape == (B, K, J)
    assert jnp.allclose(out_sh, ref_sh, atol=1e-4, rtol=1e-4)

    # --- share=True, no bias ---
    out_sh_nb = jax.block_until_ready(
        parallel_linear_forward(x, w_sh, None, n_parallel=K, share=True))
    ref_sh_nb = jnp.einsum('bkl,lj->bkj', x, w_sh[0])
    assert jnp.allclose(out_sh_nb, ref_sh_nb, atol=1e-4, rtol=1e-4)

    print("KERNEL_OK")
</pallas_src>

<mosaic_0001>
module attributes {stable_mosaic.version = 11 : i64} {
  func.func @_parallel_kernel_bias(%arg0: i32, %arg1: memref<8x4x32xf32, #tpu.memory_space<vmem>>, %arg2: memref<4x32x16xf32, #tpu.memory_space<vmem>>, %arg3: memref<4x16xf32, #tpu.memory_space<vmem>>, %arg4: memref<8x4x16xf32, #tpu.memory_space<vmem>>) attributes {dimension_semantics = [#tpu.dimension_semantics<parallel>], iteration_bounds = array<i64: 1>, scalar_prefetch = 0 : i64, scratch_operands = 0 : i64, tpu.core_type = #tpu.core_type<tc>, window_params = [{transform_indices = @transform_0, window_bounds = array<i64: 8, 4, 32>}, {pipeline_mode = #tpu.pipeline_mode<synchronous>, transform_indices = @transform_1, window_bounds = array<i64: 4, 32, 16>}, {pipeline_mode = #tpu.pipeline_mode<synchronous>, transform_indices = @transform_2, window_bounds = array<i64: 4, 16>}, {transform_indices = @transform_3, window_bounds = array<i64: 8, 4, 16>}]} {
    %c0 = arith.constant 0 : index
    %c0_0 = arith.constant 0 : index
    %0 = vector.load %arg3[%c0, %c0_0] : memref<4x16xf32, #tpu.memory_space<vmem>>, vector<4x16xf32>
    %c0_1 = arith.constant 0 : index
    %c0_2 = arith.constant 0 : index
    %c0_3 = arith.constant 0 : index
    %1 = vector.load %arg1[%c0_1, %c0_2, %c0_3] : memref<8x4x32xf32, #tpu.memory_space<vmem>>, vector<8x1x32xf32>
    %2 = vector.shape_cast %1 : vector<8x1x32xf32> to vector<8x32xf32>
    %c0_4 = arith.constant 0 : index
    %c0_5 = arith.constant 0 : index
    %c0_6 = arith.constant 0 : index
    %3 = vector.load %arg2[%c0_4, %c0_5, %c0_6] : memref<4x32x16xf32, #tpu.memory_space<vmem>>, vector<1x32x16xf32>
    %4 = vector.shape_cast %3 : vector<1x32x16xf32> to vector<32x16xf32>
    %cst = arith.constant dense<0.000000e+00> : vector<8x16xf32>
    %5 = tpu.matmul %2, %4, %cst {dimension_numbers = #tpu.dot_dimension_numbers<[1], [0], [0], [1], [0, 0, 1, 1], [], []>} : vector<8x32xf32>, vector<32x16xf32>, vector<8x16xf32> -> vector<8x16xf32>
    %6 = vector.extract_strided_slice %0 {offsets = [0, 0], sizes = [1, 16], strides = [1, 1]} : vector<4x16xf32> to vector<1x16xf32>
    %7 = vector.broadcast %6 : vector<1x16xf32> to vector<8x16xf32>
    %8 = arith.addf %5, %7 : vector<8x16xf32>
    %c0_7 = arith.constant 0 : index
    %c0_8 = arith.constant 0 : index
    %c0_9 = arith.constant 0 : index
    %9 = vector.load %arg4[%c0_7, %c0_8, %c0_9] : memref<8x4x16xf32, #tpu.memory_space<vmem>>, vector<8x1x16xf32>
    %10 = vector.shape_cast %9 : vector<8x1x16xf32> to vector<8x16xf32>
    %11 = vector.shape_cast %8 : vector<8x16xf32> to vector<8x1x16xf32>
    tpu.vector_store %arg4[%c0_7, %c0_8, %c0_9], %11 {strides = array<i32>} : memref<8x4x16xf32, #tpu.memory_space<vmem>>, vector<8x1x16xf32>,
    %c0_10 = arith.constant 0 : index
    %c1 = arith.constant 1 : index
    %c0_11 = arith.constant 0 : index
    %12 = vector.load %arg1[%c0_10, %c1, %c0_11] : memref<8x4x32xf32, #tpu.memory_space<vmem>>, vector<8x1x32xf32>
    %13 = vector.shape_cast %12 : vector<8x1x32xf32> to vector<8x32xf32>
    %c1_12 = arith.constant 1 : index
    %c0_13 = arith.constant 0 : index
    %c0_14 = arith.constant 0 : index
    %14 = vector.load %arg2[%c1_12, %c0_13, %c0_14] : memref<4x32x16xf32, #tpu.memory_space<vmem>>, vector<1x32x16xf32>
    %15 = vector.shape_cast %14 : vector<1x32x16xf32> to vector<32x16xf32>
    %cst_15 = arith.constant dense<0.000000e+00> : vector<8x16xf32>
    %16 = tpu.matmul %13, %15, %cst_15 {dimension_numbers = #tpu.dot_dimension_numbers<[1], [0], [0], [1], [0, 0, 1, 1], [], []>} : vector<8x32xf32>, vector<32x16xf32>, vector<8x16xf32> -> vector<8x16xf32>
    %17 = vector.extract_strided_slice %0 {offsets = [1, 0], sizes = [1, 16], strides = [1, 1]} : vector<4x16xf32> to vector<1x16xf32>
    %18 = vector.broadcast %17 : vector<1x16xf32> to vector<8x16xf32>
    %19 = arith.addf %16, %18 : vector<8x16xf32>
    %c0_16 = arith.constant 0 : index
    %c1_17 = arith.constant 1 : index
    %c0_18 = arith.constant 0 : index
    %20 = vector.load %arg4[%c0_16, %c1_17, %c0_18] : memref<8x4x16xf32, #tpu.memory_space<vmem>>, vector<8x1x16xf32>
    %21 = vector.shape_cast %20 : vector<8x1x16xf32> to vector<8x16xf32>
    %22 = vector.shape_cast %19 : vector<8x16xf32> to vector<8x1x16xf32>
    tpu.vector_store %arg4[%c0_16, %c1_17, %c0_18], %22 {strides = array<i32>} : memref<8x4x16xf32, #tpu.memory_space<vmem>>, vector<8x1x16xf32>,
    %c0_19 = arith.constant 0 : index
    %c2 = arith.constant 2 : index
    %c0_20 = arith.constant 0 : index
    %23 = vector.load %arg1[%c0_19, %c2, %c0_20] : memref<8x4x32xf32, #tpu.memory_space<vmem>>, vector<8x1x32xf32>
    %24 = vector.shape_cast %23 : vector<8x1x32xf32> to vector<8x32xf32>
    %c2_21 = arith.constant 2 : index
    %c0_22 = arith.constant 0 : index
    %c0_23 = arith.constant 0 : index
    %25 = vector.load %arg2[%c2_21, %c0_22, %c0_23] : memref<4x32x16xf32, #tpu.memory_space<vmem>>, vector<1x32x16xf32>
    %26 = vector.shape_cast %25 : vector<1x32x16xf32> to vector<32x16xf32>
    %cst_24 = arith.constant dense<0.000000e+00> : vector<8x16xf32>
    %27 = tpu.matmul %24, %26, %cst_24 {dimension_numbers = #tpu.dot_dimension_numbers<[1], [0], [0], [1], [0, 0, 1, 1], [], []>} : vector<8x32xf32>, vector<32x16xf32>, vector<8x16xf32> -> vector<8x16xf32>
    %28 = vector.extract_strided_slice %0 {offsets = [2, 0], sizes = [1, 16], strides = [1, 1]} : vector<4x16xf32> to vector<1x16xf32>
    %29 = vector.broadcast %28 : vector<1x16xf32> to vector<8x16xf32>
    %30 = arith.addf %27, %29 : vector<8x16xf32>
    %c0_25 = arith.constant 0 : index
    %c2_26 = arith.constant 2 : index
    %c0_27 = arith.constant 0 : index
    %31 = vector.load %arg4[%c0_25, %c2_26, %c0_27] : memref<8x4x16xf32, #tpu.memory_space<vmem>>, vector<8x1x16xf32>
    %32 = vector.shape_cast %31 : vector<8x1x16xf32> to vector<8x16xf32>
    %33 = vector.shape_cast %30 : vector<8x16xf32> to vector<8x1x16xf32>
    tpu.vector_store %arg4[%c0_25, %c2_26, %c0_27], %33 {strides = array<i32>} : memref<8x4x16xf32, #tpu.memory_space<vmem>>, vector<8x1x16xf32>,
    %c0_28 = arith.constant 0 : index
    %c3 = arith.constant 3 : index
    %c0_29 = arith.constant 0 : index
    %34 = vector.load %arg1[%c0_28, %c3, %c0_29] : memref<8x4x32xf32, #tpu.memory_space<vmem>>, vector<8x1x32xf32>
    %35 = vector.shape_cast %34 : vector<8x1x32xf32> to vector<8x32xf32>
    %c3_30 = arith.constant 3 : index
    %c0_31 = arith.constant 0 : index
    %c0_32 = arith.constant 0 : index
    %36 = vector.load %arg2[%c3_30, %c0_31, %c0_32] : memref<4x32x16xf32, #tpu.memory_space<vmem>>, vector<1x32x16xf32>
    %37 = vector.shape_cast %36 : vector<1x32x16xf32> to vector<32x16xf32>
    %cst_33 = arith.constant dense<0.000000e+00> : vector<8x16xf32>
    %38 = tpu.matmul %35, %37, %cst_33 {dimension_numbers = #tpu.dot_dimension_numbers<[1], [0], [0], [1], [0, 0, 1, 1], [], []>} : vector<8x32xf32>, vector<32x16xf32>, vector<8x16xf32> -> vector<8x16xf32>
    %39 = vector.extract_strided_slice %0 {offsets = [3, 0], sizes = [1, 16], strides = [1, 1]} : vector<4x16xf32> to vector<1x16xf32>
    %40 = vector.broadcast %39 : vector<1x16xf32> to vector<8x16xf32>
    %41 = arith.addf %38, %40 : vector<8x16xf32>
    %c0_34 = arith.constant 0 : index
    %c3_35 = arith.constant 3 : index
    %c0_36 = arith.constant 0 : index
    %42 = vector.load %arg4[%c0_34, %c3_35, %c0_36] : memref<8x4x16xf32, #tpu.memory_space<vmem>>, vector<8x1x16xf32>
    %43 = vector.shape_cast %42 : vector<8x1x16xf32> to vector<8x16xf32>
    %44 = vector.shape_cast %41 : vector<8x16xf32> to vector<8x1x16xf32>
    tpu.vector_store %arg4[%c0_34, %c3_35, %c0_36], %44 {strides = array<i32>} : memref<8x4x16xf32, #tpu.memory_space<vmem>>, vector<8x1x16xf32>,
    return
  }
  func.func @transform_0(%arg0: i32) -> (i32, i32, i32) {
    %c0_i32 = arith.constant 0 : i32
    %c0_i32_0 = arith.constant 0 : i32
    %c0_i32_1 = arith.constant 0 : i32
    return %arg0, %c0_i32, %c0_i32_0 : i32, i32, i32
  }
  func.func @transform_1(%arg0: i32) -> (i32, i32, i32) {
    %c0_i32 = arith.constant 0 : i32
    %c0_i32_0 = arith.constant 0 : i32
    %c0_i32_1 = arith.constant 0 : i32
    %c0_i32_2 = arith.constant 0 : i32
    return %c0_i32, %c0_i32_0, %c0_i32_1 : i32, i32, i32
  }
  func.func @transform_2(%arg0: i32) -> (i32, i32) {
    %c0_i32 = arith.constant 0 : i32
    %c0_i32_0 = arith.constant 0 : i32
    %c0_i32_1 = arith.constant 0 : i32
    return %c0_i32, %c0_i32_0 : i32, i32
  }
  func.func @transform_3(%arg0: i32) -> (i32, i32, i32) {
    %c0_i32 = arith.constant 0 : i32
    %c0_i32_0 = arith.constant 0 : i32
    %c0_i32_1 = arith.constant 0 : i32
    return %arg0, %c0_i32, %c0_i32_0 : i32, i32, i32
  }
}

</mosaic_0001>

<bundles_post_ra>
// kernel: parallel_linear_forward.1
= control target key start
LH: loop header
LB: loop body
LE: loop exit
PB: predicated region body
PF: predicated region fallthrough
CT: control target
= control target key end

     0   :  { %v883_v3 = vmov 0.0|0.0   ;;  %vm41_vm0 = vcmask 1041409   ;;  %vm44_vm1 = vcmask 1042434   ;;  %vm884_vm2 = vmmov 0   ;;  %s1175_s0 = inlined_call_operand.vmem [shape: f32[8,4,32], index: 0, kind: input, shape index: {}]   ;;  %s1176_s1 = inlined_call_operand.vmem [shape: f32[4,32,16], index: 1, kind: input, shape index: {}]   ;;  %s1177_s2 = inlined_call_operand.vmem [shape: f32[4,16], index: 2, kind: input, shape index: {}]   ;;  %s1178_s3 = inlined_call_operand.hbm [shape: f32[8,4,16], index: 3, kind: output, shape index: {}]  }
   0x1   :  { %v24_v0 = vld [vmem:[%s1176_s1] sm:$0xff]  ;;  %v25_v1 = vld [vmem:[%s1176_s1 + $0x8] sm:$0xff]  ;;  %828 = vmatprep.subr.bf16.mxu0 %v883_v3  ;;  %834 = vmatprep.subr.bf16.mxu1 %v883_v3  ;;  %v26_v6 = vld [vmem:[%s1176_s1 + $0x10] sm:$0xff]  ;;  %v885_v11 = vmov 0.0   ;;  %vm47_vm3 = vcmask 1043459   ;;  %vm50_vm4 = vcmask 1044484  }
   0x2   :  { %v749_v2 = vld [vmem:[%s1176_s1 + $0x20] sm:$0xff]  ;;  %v829_v4 = vpack.c.bf16 %v25_v1, %v24_v0  ;;  %v750_v5 = vld [vmem:[%s1176_s1 + $0x28] sm:$0xff]  ;;  %v27_v7 = vld [vmem:[%s1176_s1 + $0x18] sm:$0xff]  ;;  %792 = vmatprep.mubr.msk.f32.mxu0 %vm884_vm2, %v885_v11  ;;  %803 = vmatprep.mubr.msk.f32.mxu1 %vm884_vm2, %v885_v11  ;;  %vm53_vm5 = vcmask 1045509   ;;  %vm56_vm6 = vcmask 1046534   ;;  %vm59_vm7 = vcmask 1047559  }
   0x3   :  { %v835_v8 = vpack.c.bf16 %v750_v5, %v749_v2  ;;  %v751_v9 = vld [vmem:[%s1176_s1 + $0x30] sm:$0xff]  ;;  %v752_v10 = vld [vmem:[%s1176_s1 + $0x38] sm:$0xff]  ;;  %v16_v12 = vld [vmem:[%s1175_s0] sm:$0x1]  ;;  %v832_v13 = vpack.c.bf16 %v27_v7, %v26_v6  ;;  %vm61_vm8 = vcmask 261120  }
   0x4   :  { %830 = vmatpush3.bf16.msra.mxu0 %v829_v4  ;;  %v17_v14 = vld [vmem:[%s1175_s0 + $0x4] sm:$0x1]  ;;  %v18_v15 = vld [vmem:[%s1175_s0 + $0x8] sm:$0x1]  ;;  %v19_v16 = vld [vmem:[%s1175_s0 + $0xc] sm:$0x1]  ;;  %v838_v17 = vpack.c.bf16 %v752_v10, %v751_v9 }
   0x5   :  { %836 = vmatpush3.bf16.msra.mxu1 %v835_v8  ;;  %831 = vmatprep.subr.bf16.mxu0 %v883_v3  ;;  %v20_v18 = vld [vmem:[%s1175_s0 + $0x10] sm:$0x1]  ;;  %v21_v19 = vld [vmem:[%s1175_s0 + $0x14] sm:$0x1]  ;;  %v22_v20 = vld [vmem:[%s1175_s0 + $0x18] sm:$0x1] }
   0x6   :  { %837 = vmatprep.subr.bf16.mxu1 %v883_v3  ;;  %v23_v21 = vld [vmem:[%s1175_s0 + $0x1c] sm:$0x1]  ;;  %v40_v22 = vrot.slane %v17_v14, 7  ;;  %v43_v23 = vrot.slane %v18_v15, 6  ;;  %v46_v24 = vrot.slane %v19_v16, 5  ;;  %v49_v25 = vrot.slane %v20_v18, 4 }
   0x7   :  { %v52_v26 = vrot.slane %v21_v19, 3  ;;  %v55_v27 = vrot.slane %v22_v20, 2  ;;  %v201_v28 = vld [vmem:[%s1175_s0 + $0x1] sm:$0x1]  ;;  %v58_v30 = vrot.slane %v23_v21, 1  ;;  %v755_v46 = vld [vmem:[%s1176_s1 + $0x48] sm:$0xff] }
   0x8   :  { %833 = vmatpush3.bf16.msra.mxu0 %v832_v13  ;;  %v42_v29 = vsel %vm41_vm0, %v40_v22, %v16_v12  ;;  %v202_v31 = vld [vmem:[%s1175_s0 + $0x5] sm:$0x1]  ;;  %v203_v32 = vld [vmem:[%s1175_s0 + $0x9] sm:$0x1]  ;;  %v204_v34 = vld [vmem:[%s1175_s0 + $0xd] sm:$0x1] }
   0x9   :  { %839 = vmatpush3.bf16.msra.mxu1 %v838_v17  ;;  %v45_v33 = vsel %vm44_vm1, %v43_v23, %v42_v29  ;;  %v205_v35 = vld [vmem:[%s1175_s0 + $0x11] sm:$0x1]  ;;  %v206_v36 = vld [vmem:[%s1175_s0 + $0x15] sm:$0x1]  ;;  %840 = vmatprep.subr.bf16.mxu0 %v883_v3  ;;  %v207_v38 = vld [vmem:[%s1175_s0 + $0x19] sm:$0x1] }
   0xa   :  { %v48_v37 = vsel %vm47_vm3, %v46_v24, %v45_v33  ;;  %v208_v39 = vld [vmem:[%s1175_s0 + $0x1d] sm:$0x1]  ;;  %v226_v40 = vrot.slane %v202_v31, 7  ;;  %v228_v41 = vrot.slane %v203_v32, 6  ;;  %846 = vmatprep.subr.bf16.mxu1 %v883_v3  ;;  %v230_v43 = vrot.slane %v204_v34, 5  ;;  %v754_v45 = vld [vmem:[%s1176_s1 + $0x40] sm:$0xff] }
   0xb   :  { %v51_v42 = vsel %vm50_vm4, %v49_v25, %v48_v37  ;;  %v232_v44 = vrot.slane %v205_v35, 4  ;;  %v759_v47 = vld [vmem:[%s1176_s1 + $0x60] sm:$0xff]  ;;  %v234_v50 = vrot.slane %v206_v36, 3  ;;  %v236_v51 = vrot.slane %v207_v38, 2  ;;  %v760_v52 = vld [vmem:[%s1176_s1 + $0x68] sm:$0xff]  ;;  %v756_v53 = vld [vmem:[%s1176_s1 + $0x50] sm:$0xff] }
   0xc   :  { %v54_v48 = vsel %vm53_vm5, %v52_v26, %v51_v42  ;;  %v227_v49 = vsel %vm41_vm0, %v226_v40, %v201_v28  ;;  %v757_v54 = vld [vmem:[%s1176_s1 + $0x58] sm:$0xff]  ;;  %v238_v57 = vrot.slane %v208_v39, 1  ;;  %v841_v58 = vpack.c.bf16 %v755_v46, %v754_v45  ;;  %v378_v59 = vld [vmem:[%s1175_s0 + $0x2] sm:$0x1]  ;;  %v379_v62 = vld [vmem:[%s1175_s0 + $0x6] sm:$0x1] }
   0xd   :  { %v57_v55 = vsel %vm56_vm6, %v55_v27, %v54_v48  ;;  %v229_v56 = vsel %vm44_vm1, %v228_v41, %v227_v49  ;;  %v380_v63 = vld [vmem:[%s1175_s0 + $0xa] sm:$0x1]  ;;  %v381_v0 = vld [vmem:[%s1175_s0 + $0xe] sm:$0x1]  ;;  %v847_v2 = vpack.c.bf16 %v760_v52, %v759_v47  ;;  %v844_v4 = vpack.c.bf16 %v757_v54, %v756_v53  ;;  %v382_v5 = vld [vmem:[%s1175_s0 + $0x12] sm:$0x1] }
   0xe   :  { %v60_v60 = vsel %vm59_vm7, %v58_v30, %v57_v55  ;;  %v231_v61 = vsel %vm47_vm3, %v230_v43, %v229_v56  ;;  %v383_v6 = vld [vmem:[%s1175_s0 + $0x16] sm:$0x1]  ;;  %v384_v7 = vld [vmem:[%s1175_s0 + $0x1a] sm:$0x1]  ;;  %v403_v12 = vrot.slane %v379_v62, 7  ;;  %v405_v13 = vrot.slane %v380_v63, 6 }
   0xf   :  { %793 = vmatmul.mubr.msk.f32.vlgmr.msra.gmra.mrb[0].mxu0 %vm61_vm8, %v60_v60  ;;  %v233_v1 = vsel %vm50_vm4, %v232_v44, %v231_v61  ;;  %v761_v9 = vld [vmem:[%s1176_s1 + $0x70] sm:$0xff]  ;;  %v762_v10 = vld [vmem:[%s1176_s1 + $0x78] sm:$0xff]  ;;  %v407_v14 = vrot.slane %v381_v0, 5  ;;  %v409_v17 = vrot.slane %v382_v5, 4  ;;  %v411_v18 = vrot.slane %v383_v6, 3 }
  0x10   :  { %v235_v8 = vsel %vm53_vm5, %v234_v50, %v233_v1  ;;  %842 = vmatpush3.bf16.msra.mxu0 %v841_v58  ;;  %814 = vmatprep.mubr.msk.f32.mxu0 %vm884_vm2, %v885_v11  ;;  %v385_v16 = vld [vmem:[%s1175_s0 + $0x1e] sm:$0x1]  ;;  %v413_v19 = vrot.slane %v384_v7, 2  ;;  %v404_v21 = vsel %vm41_vm0, %v403_v12, %v378_v59  ;;  %v555_v22 = vld [vmem:[%s1175_s0 + $0x3] sm:$0x1]  ;;  %v850_v25 = vpack.c.bf16 %v762_v10, %v761_v9 }
  0x11   :  { %v237_v15 = vsel %vm56_vm6, %v236_v51, %v235_v8  ;;  %843 = vmatprep.subr.bf16.mxu0 %v883_v3  ;;  %v556_v23 = vld [vmem:[%s1175_s0 + $0x7] sm:$0x1]  ;;  %v557_v24 = vld [vmem:[%s1175_s0 + $0xb] sm:$0x1]  ;;  %v406_v26 = vsel %vm44_vm1, %v405_v13, %v404_v21  ;;  %v558_v27 = vld [vmem:[%s1175_s0 + $0xf] sm:$0x1] }
  0x12   :  { %v239_v20 = vsel %vm59_vm7, %v238_v57, %v237_v15  ;;  %v559_v28 = vld [vmem:[%s1175_s0 + $0x13] sm:$0x1]  ;;  %v560_v29 = vld [vmem:[%s1175_s0 + $0x17] sm:$0x1]  ;;  %v408_v30 = vsel %vm47_vm3, %v407_v14, %v406_v26  ;;  %v415_v31 = vrot.slane %v385_v16, 1  ;;  %v580_v33 = vrot.slane %v556_v23, 7 }
  0x13   :  { %804 = vmatmul.mubr.msk.f32.vlgmr.msra.gmra.mrb[0].mxu1 %vm61_vm8, %v239_v20  ;;  %v561_v32 = vld [vmem:[%s1175_s0 + $0x1b] sm:$0x1]  ;;  %v582_v34 = vrot.slane %v557_v24, 6  ;;  %v410_v35 = vsel %vm50_vm4, %v409_v17, %v408_v30  ;;  %v562_v36 = vld [vmem:[%s1175_s0 + $0x1f] sm:$0x1]  ;;  %v584_v37 = vrot.slane %v558_v27, 5 }
  0x14   :  { %848 = vmatpush3.bf16.msra.mxu1 %v847_v2  ;;  %845 = vmatpush3.bf16.msra.mxu0 %v844_v4  ;;  %v586_v38 = vrot.slane %v559_v28, 4  ;;  %v412_v39 = vsel %vm53_vm5, %v411_v18, %v410_v35  ;;  %v581_v40 = vsel %vm41_vm0, %v580_v33, %v555_v22  ;;  %v588_v41 = vrot.slane %v560_v29, 3 }
  0x15   :  { %849 = vmatprep.subr.bf16.mxu1 %v883_v3  ;;  %825 = vmatprep.mubr.msk.f32.mxu1 %vm884_vm2, %v885_v11 }
  0x16   :  { %8 = vsyncpa [#allocation3], 0  ;;  %v414_v42 = vsel %vm56_vm6, %v413_v19, %v412_v39  ;;  %v583_v3 = vsel %vm44_vm1, %v582_v34, %v581_v40  ;;  %v590_v43 = vrot.slane %v561_v32, 2  ;;  %v592_v45 = vrot.slane %v562_v36, 1  ;;  %v15_v55 = vld [vmem:[%s1177_s2] sm:$0xf] }
  0x17   :  { %v416_v11 = vsel %vm59_vm7, %v415_v31, %v414_v42  ;;  %v585_v44 = vsel %vm47_vm3, %v584_v37, %v583_v3  ;;  %v28_v50 = vlaneseq  ;;  %v886_v52 = vmov 1966171168   ;;  %s887_s2 = smov [#allocation2]  }
  0x18   :  { %851 = vmatpush3.bf16.msra.mxu1 %v850_v25  ;;  %815 = vmatmul.mubr.msk.f32.vlgmr.msra.gmra.mrb[2].mxu0 %vm61_vm8, %v416_v11  ;;  %v587_v46 = vsel %vm50_vm4, %v586_v38, %v585_v44  ;;  %v137_v53 = vunpack.c.l.s4 %v886_v52  ;;  %vm192_vm9 = vcmask 122880   ;;  %s737_s27 = sshll.u32 %s887_s2, 4  ;;  %s738_s27 = int_to_ptr.vmem [resolvable:$true] %s737_s27 }
  0x19   :  { %v589_v47 = vsel %vm53_vm5, %v588_v41, %v587_v46  ;;  %v29_v51 = vshrl.u32 %v28_v50, 7  ;;  %s859_s28 = scalar_lea.vmem %s738_s27, 512  ;;  %p864_p1 = scmp.lt.s32.totalorder %s738_s27, %s738_s27 }
  0x1a   :  { %v591_v48 = vsel %vm56_vm6, %v590_v43, %v589_v47  ;;  %v138_v56 = vunpack.c.0.s8 %v137_v53  ;;  %p860_p0 = scmp.ne.s32.totalorder %s738_s27, %s859_s28  ;;  %p865_p2 = scmp.lt.s32.totalorder %s859_s28, %s859_s28 }
  0x1b   :  { %v593_v49 = vsel %vm59_vm7, %v592_v45, %v591_v48  ;;  %v30_v54 = vsub.s32 0, %v29_v51  ;;  %v216_v58 = vsub.s32 1, %v29_v51  ;;  %v393_v0 = vsub.s32 2, %v29_v51 }
  0x1c   :  { %826 = vmatmul.mubr.msk.f32.vlgmr.msra.gmra.mrb[2].mxu1 %vm61_vm8, %v593_v49  ;;  %v1105_v59 = vsub.s32 %v138_v56, %v29_v51  ;;  %v570_v12 = vsub.s32 3, %v29_v51  ;;  %p866_p3 = por %p865_p2, %p864_p1 }
  0x1d   :  { %v31_v57 = vrot.slane %v15_v55, %v30_v54  ;;  %v217_v62 = vrot.slane %v15_v55, %v216_v58  ;;  %v394_v10 = vrot.slane %v15_v55, %v393_v0 }
  0x1e   :  { %v571_v28 = vrot.slane %v15_v55, %v570_v12  ;;  %p867_p4 = pnand %p866_p3, %p860_p0 }
  0xe2   :  { %v130_v60 = vpop.f32.mrb[0].mxu0 }
  0xe3   :  { %v131_v61 = vadd.f32 %v130_v60, %v31_v57  ;;  %v794_v63 = vpop.f32.mrb[1].mxu0 }
  0xe5   :  { %v135_v1 = vcombine.high %v131_v61, %v131_v61  ;;  %v142_v2 = vrot.slane %v131_v61, %v1105_v59 }
  0xe6   :  { %v308_v4 = vpop.f32.mrb[0].mxu1 }
  0xe7   :  { %v149_v5 = vrot.slane %v135_v1, %v1105_v59  ;;  %v150_v6 = vcombine.high %v142_v2, %v142_v2  ;;  %v158_v7 = vrot.slane %v142_v2, %v1105_v59  ;;  %v309_v8 = vadd.f32 %v308_v4, %v217_v62  ;;  %v805_v9 = vpop.f32.mrb[1].mxu1 }
  0xe9   :  { %v151_v13 = vcombine.high %v149_v5, %v149_v5  ;;  %v165_v14 = vrot.slane %v149_v5, %v1105_v59  ;;  %v172_v15 = vrot.slane %v150_v6, %v1105_v59  ;;  %v180_v16 = vcombine.high %v158_v7, %v158_v7  ;;  %193 = vst.msk [vmem:[#allocation2] sm:$0x1] %vm192_vm9, %v158_v7 }
  0xea   :  { %v313_v17 = vcombine.high %v309_v8, %v309_v8  ;;  %v320_v18 = vrot.slane %v309_v8, %v1105_v59 }
  0xeb   :  { %v179_v19 = vrot.slane %v151_v13, %v1105_v59  ;;  %v181_v20 = vcombine.high %v165_v14, %v165_v14  ;;  %v182_v21 = vcombine.high %v172_v15, %v172_v15  ;;  %194 = vst.msk [vmem:[#allocation2 + $0x4] sm:$0x1] %vm192_vm9, %v172_v15  ;;  %195 = vst.msk [vmem:[#allocation2 + $0x8] sm:$0x1] %vm192_vm9, %v180_v16  ;;  %v485_v25 = vpop.f32.mrb[2].mxu0 }
  0xec   :  { %197 = vst.msk [vmem:[#allocation2 + $0x10] sm:$0x1] %vm192_vm9, %v165_v14  ;;  %v327_v22 = vrot.slane %v313_v17, %v1105_v59  ;;  %v328_v23 = vcombine.high %v320_v18, %v320_v18  ;;  %v336_v24 = vrot.slane %v320_v18, %v1105_v59  ;;  %v486_v27 = vadd.f32 %v485_v25, %v394_v10  ;;  %v816_v29 = vpop.f32.mrb[3].mxu0 }
  0xed   :  { %v183_v26 = vcombine.high %v179_v19, %v179_v19  ;;  %196 = vst.msk [vmem:[#allocation2 + $0xc] sm:$0x1] %vm192_vm9, %v182_v21  ;;  %198 = vst.msk [vmem:[#allocation2 + $0x14] sm:$0x1] %vm192_vm9, %v179_v19 }
  0xee   :  { %199 = vst.msk [vmem:[#allocation2 + $0x18] sm:$0x1] %vm192_vm9, %v181_v20  ;;  %v329_v30 = vcombine.high %v327_v22, %v327_v22  ;;  %v343_v31 = vrot.slane %v327_v22, %v1105_v59  ;;  %v350_v32 = vrot.slane %v328_v23, %v1105_v59  ;;  %v358_v33 = vcombine.high %v336_v24, %v336_v24 }
  0xef   :  { %370 = vst.msk [vmem:[#allocation2 + $0x1] sm:$0x1] %vm192_vm9, %v336_v24  ;;  %200 = vst.msk [vmem:[#allocation2 + $0x1c] sm:$0x1] %vm192_vm9, %v183_v26  ;;  %v490_v34 = vcombine.high %v486_v27, %v486_v27  ;;  %v497_v35 = vrot.slane %v486_v27, %v1105_v59  ;;  %v662_v39 = vpop.f32.mrb[2].mxu1 }
  0xf0   :  { %v357_v36 = vrot.slane %v329_v30, %v1105_v59  ;;  %v359_v37 = vcombine.high %v343_v31, %v343_v31  ;;  %v360_v38 = vcombine.high %v350_v32, %v350_v32  ;;  %371 = vst.msk [vmem:[#allocation2 + $0x5] sm:$0x1] %vm192_vm9, %v350_v32  ;;  %372 = vst.msk [vmem:[#allocation2 + $0x9] sm:$0x1] %vm192_vm9, %v358_v33  ;;  %v827_v43 = vpop.f32.mrb[3].mxu1 }
  0xf1   :  { %374 = vst.msk [vmem:[#allocation2 + $0x11] sm:$0x1] %vm192_vm9, %v343_v31  ;;  %v504_v40 = vrot.slane %v490_v34, %v1105_v59  ;;  %v505_v41 = vcombine.high %v497_v35, %v497_v35  ;;  %v513_v42 = vrot.slane %v497_v35, %v1105_v59  ;;  %v663_v3 = vadd.f32 %v662_v39, %v571_v28 }
  0xf2   :  { %v361_v11 = vcombine.high %v357_v36, %v357_v36  ;;  %373 = vst.msk [vmem:[#allocation2 + $0xd] sm:$0x1] %vm192_vm9, %v360_v38  ;;  %375 = vst.msk [vmem:[#allocation2 + $0x15] sm:$0x1] %vm192_vm9, %v357_v36 }
  0xf3   :  { %376 = vst.msk [vmem:[#allocation2 + $0x19] sm:$0x1] %vm192_vm9, %v359_v37  ;;  %v506_v44 = vcombine.high %v504_v40, %v504_v40  ;;  %v520_v45 = vrot.slane %v504_v40, %v1105_v59  ;;  %v527_v46 = vrot.slane %v505_v41, %v1105_v59  ;;  %v535_v47 = vcombine.high %v513_v42, %v513_v42 }
  0xf4   :  { %547 = vst.msk [vmem:[#allocation2 + $0x2] sm:$0x1] %vm192_vm9, %v513_v42  ;;  %377 = vst.msk [vmem:[#allocation2 + $0x1d] sm:$0x1] %vm192_vm9, %v361_v11  ;;  %v667_v48 = vcombine.high %v663_v3, %v663_v3  ;;  %v674_v49 = vrot.slane %v663_v3, %v1105_v59 }
  0xf5   :  { %v534_v50 = vrot.slane %v506_v44, %v1105_v59  ;;  %v536_v51 = vcombine.high %v520_v45, %v520_v45  ;;  %v537_v52 = vcombine.high %v527_v46, %v527_v46  ;;  %548 = vst.msk [vmem:[#allocation2 + $0x6] sm:$0x1] %vm192_vm9, %v527_v46  ;;  %549 = vst.msk [vmem:[#allocation2 + $0xa] sm:$0x1] %vm192_vm9, %v535_v47 }
  0xf6   :  { %551 = vst.msk [vmem:[#allocation2 + $0x12] sm:$0x1] %vm192_vm9, %v520_v45  ;;  %v681_v53 = vrot.slane %v667_v48, %v1105_v59  ;;  %v682_v54 = vcombine.high %v674_v49, %v674_v49  ;;  %v690_v55 = vrot.slane %v674_v49, %v1105_v59 }
  0xf7   :  { %v538_v56 = vcombine.high %v534_v50, %v534_v50  ;;  %550 = vst.msk [vmem:[#allocation2 + $0xe] sm:$0x1] %vm192_vm9, %v537_v52  ;;  %552 = vst.msk [vmem:[#allocation2 + $0x16] sm:$0x1] %vm192_vm9, %v534_v50 }
  0xf8   :  { %553 = vst.msk [vmem:[#allocation2 + $0x1a] sm:$0x1] %vm192_vm9, %v536_v51  ;;  %v683_v57 = vcombine.high %v681_v53, %v681_v53  ;;  %v697_v58 = vrot.slane %v681_v53, %v1105_v59  ;;  %v704_v60 = vrot.slane %v682_v54, %v1105_v59  ;;  %v712_v61 = vcombine.high %v690_v55, %v690_v55 }
  0xf9   :  { %724 = vst.msk [vmem:[#allocation2 + $0x3] sm:$0x1] %vm192_vm9, %v690_v55  ;;  %554 = vst.msk [vmem:[#allocation2 + $0x1e] sm:$0x1] %vm192_vm9, %v538_v56 }
  0xfa   :  { %v711_v62 = vrot.slane %v683_v57, %v1105_v59  ;;  %v713_v63 = vcombine.high %v697_v58, %v697_v58  ;;  %v714_v0 = vcombine.high %v704_v60, %v704_v60  ;;  %725 = vst.msk [vmem:[#allocation2 + $0x7] sm:$0x1] %vm192_vm9, %v704_v60  ;;  %726 = vst.msk [vmem:[#allocation2 + $0xb] sm:$0x1] %vm192_vm9, %v712_v61 }
  0xfb   :  { %728 = vst.msk [vmem:[#allocation2 + $0x13] sm:$0x1] %vm192_vm9, %v697_v58 }
  0xfc   :  { %v715_v1 = vcombine.high %v711_v62, %v711_v62  ;;  %727 = vst.msk [vmem:[#allocation2 + $0xf] sm:$0x1] %vm192_vm9, %v714_v0  ;;  %729 = vst.msk [vmem:[#allocation2 + $0x17] sm:$0x1] %vm192_vm9, %v711_v62 }
  0xfd   :  { %730 = vst.msk [vmem:[#allocation2 + $0x1b] sm:$0x1] %vm192_vm9, %v713_v63 }
  0xfe   :  { %731 = vst.msk [vmem:[#allocation2 + $0x1f] sm:$0x1] %vm192_vm9, %v715_v1 }
  0xff   :  { %870 = shalt.err (!%p867_p4)
}
 0x100   :  { %s871_s4 = scalar_lea.hbm %s1178_s3, 512 }
 0x101   :  { %p872_p5 = scmp.ne.s32.totalorder %s1178_s3, %s871_s4  ;;  %p875_p6 = scmp.lt.u32.totalorder %s871_s4, %s1178_s3 }
 0x103   :  { %p877_p7 = pnand %p875_p6, %p872_p5 }
 0x105   :  { %880 = shalt.err (!%p877_p7)
}
 0x106   :  { %s888_s9 = smov 64   ;;  %s889_s10 = smov 4  }
 0x107   :  { %743 = dma.vmem_to_hbm [thread:$0]  %s738_s27, 512, %s1178_s3, [#allocation3], %s888_s9, %s888_s9, %s889_s10  }
 0x108   :  { %881 = dma.done.wait [#allocation3], 512  }
 0x109   :  { %882 = vsyncadd [#allocation3], 4294966784 }
 0x10a   :  { %747 = vsyncpa [#allocation3], 1 }

</bundles_post_ra>
